<compile_context>
chip_gen: v6e
topology: v6e:2x2x1
jax: 0.10.0
libtpu: 0.0.40
codegen_flags: <defaults>
</compile_context>

<pallas_src>
import functools

import jax
import jax.numpy as jnp
from jax.experimental import pallas as pl
from jax.experimental.pallas import tpu as pltpu

D_IN = 784
LANE = 128
SUBLANE = 8


def _round_up(x, m):
    return (x + m - 1) // m * m


def svm_linear_kernel(x_ref, w_ref, b_ref, o_ref):
    # x_ref: (TM, K_pad) bf16 batch tile, w_ref: (K_pad, N_pad) bf16
    # (VMEM-resident for the whole grid), b_ref: (1, N_pad) f32.
    # Single MXU matmul with f32 accumulation + f32 bias add in the epilogue,
    # lane-dense (N_pad = 128) store.
    acc = jnp.dot(x_ref[...], w_ref[...], preferred_element_type=jnp.float32)
    o_ref[...] = (acc + b_ref[...]).astype(o_ref.dtype)


def prepare_svm_params(weight, bias, *, d_in=D_IN):
    """One-time parameter prep (done at init, NOT per forward call):
       - transpose PyTorch (D_out, D_in) -> (D_in, D_out)
       - zero-pad to lane-aligned (K_pad, N_pad) = (896, 128) for D_in=784,
         D_out=10
       - cast weight to bf16 (native MXU input); keep bias in f32."""
    d_out = weight.shape[0]
    k_pad = _round_up(d_in, LANE)       # 784 -> 896
    n_pad = _round_up(d_out, LANE)      # 10  -> 128
    w_t = jnp.transpose(weight).astype(jnp.bfloat16)            # (d_in, d_out)
    w_t_pad = jnp.pad(w_t, ((0, k_pad - d_in), (0, n_pad - d_out)))
    b_pad = jnp.pad(bias.astype(jnp.float32), (0, n_pad - d_out)).reshape(1, n_pad)
    return w_t_pad, b_pad, d_out


@functools.partial(jax.jit, static_argnames=("d_in", "d_out", "tm"))
def svm_forward(x, w_t_pad, b_pad, *, d_in=D_IN, d_out=10, tm=256):
    """SVMModel.forward with pre-prepared (padded, transposed, bf16) params.

    x        : any shape with leading batch dim; per-example size == d_in
    w_t_pad  : (K_pad, N_pad) bf16 from prepare_svm_params
    b_pad    : (1, N_pad) f32 from prepare_svm_params
    returns  : (B, d_out) float32
    """
    B = x.shape[0]
    k_pad, n_pad = w_t_pad.shape

    # Glue: flatten to (B, 784) like np.reshape in the torch module, cast to
    # bf16 for the MXU, and zero-pad batch/feature dims to aligned tiles with
    # a single fused pad (done in bf16 so the padded copy is half-sized).
    x_flat = jnp.reshape(x, (B, d_in)).astype(jnp.bfloat16)
    b_rows = _round_up(max(B, SUBLANE), SUBLANE)
    tm_eff = min(tm, b_rows)            # tm=256 matches v6e/v7x MXU; 128 on v5e
    b_rows = _round_up(b_rows, tm_eff)
    x_p = jnp.pad(x_flat, ((0, b_rows - B), (0, k_pad - d_in)))

    grid = (b_rows // tm_eff,)
    out = pl.pallas_call(
        svm_linear_kernel,
        out_shape=jax.ShapeDtypeStruct((b_rows, n_pad), jnp.float32),
        grid=grid,
        in_specs=[
            pl.BlockSpec((tm_eff, k_pad), lambda i: (i, 0)),   # stream batch tiles
            pl.BlockSpec((k_pad, n_pad), lambda i: (0, 0)),    # weight: VMEM-resident
            pl.BlockSpec((1, n_pad), lambda i: (0, 0)),        # bias:   VMEM-resident
        ],
        out_specs=pl.BlockSpec((tm_eff, n_pad), lambda i: (i, 0)),
        compiler_params=pltpu.CompilerParams(
            dimension_semantics=("parallel",)),                # shard batch on v7x
    )(x_p, w_t_pad, b_pad)

    # Strip batch/lane padding back to the logical shape.
    return out[:B, :d_out]


if __name__ == "__main__":
    D_OUT = 10
    B = 2

    key = jax.random.PRNGKey(0)
    k_x, k_w, k_b = jax.random.split(key, 3)

    # Deterministic synthetic parameters (nn.Linear-style uniform init).
    bound = 1.0 / jnp.sqrt(jnp.float32(D_IN))
    weight = jax.random.uniform(k_w, (D_OUT, D_IN), jnp.float32, -bound, bound)
    bias = jax.random.uniform(k_b, (D_OUT,), jnp.float32, -bound, bound)

    # Input consistent with the forward's reshape to 784: (B, 1, 28, 28) NCHW.
    x = jax.random.normal(k_x, (B, 1, 28, 28), jnp.float32)

    # One-time parameter prep (transpose + pad + bf16 cast), then forward.
    w_t_pad, b_pad, d_out = prepare_svm_params(weight, bias, d_in=D_IN)
    out = svm_forward(x, w_t_pad, b_pad, d_in=D_IN, d_out=d_out)
    out = jax.block_until_ready(out)

    # Reference check in plain JAX (same math as torch nn.Linear), f32.
    ref = jnp.reshape(x, (B, D_IN)) @ weight.T + bias
    assert out.shape == (B, D_OUT)
    # bf16 MXU inputs with f32 accumulation -> loosened tolerance.
    assert jnp.allclose(out, ref, atol=2e-2, rtol=2e-2), (
        jnp.max(jnp.abs(out - ref)))

    # TODO(synk): SVMModel.reshape (flat-gradient unflattening helper) is a
    # host-side utility, not part of forward; not translated to Pallas.
    print("KERNEL_OK")
</pallas_src>

<mosaic_0001>
module attributes {stable_mosaic.version = 11 : i64} {
  func.func @svm_linear_kernel(%arg0: i32, %arg1: memref<8x896xbf16, #tpu.memory_space<vmem>>, %arg2: memref<896x128xbf16, #tpu.memory_space<vmem>>, %arg3: memref<1x128xf32, #tpu.memory_space<vmem>>, %arg4: memref<8x128xf32, #tpu.memory_space<vmem>>) attributes {dimension_semantics = [#tpu.dimension_semantics<parallel>], iteration_bounds = array<i64: 1>, scalar_prefetch = 0 : i64, scratch_operands = 0 : i64, tpu.core_type = #tpu.core_type<tc>, window_params = [{transform_indices = @transform_0, window_bounds = array<i64: 8, 896>}, {pipeline_mode = #tpu.pipeline_mode<synchronous>, transform_indices = @transform_1, window_bounds = array<i64: 896, 128>}, {pipeline_mode = #tpu.pipeline_mode<synchronous>, transform_indices = @transform_2, window_bounds = array<i64: 1, 128>}, {transform_indices = @transform_3, window_bounds = array<i64: 8, 128>}]} {
    %c0 = arith.constant 0 : index
    %c0_0 = arith.constant 0 : index
    %0 = vector.load %arg1[%c0, %c0_0] : memref<8x896xbf16, #tpu.memory_space<vmem>>, vector<8x896xbf16>
    %c0_1 = arith.constant 0 : index
    %c0_2 = arith.constant 0 : index
    %1 = vector.load %arg2[%c0_1, %c0_2] : memref<896x128xbf16, #tpu.memory_space<vmem>>, vector<896x128xbf16>
    %cst = arith.constant dense<0.000000e+00> : vector<8x128xf32>
    %2 = tpu.matmul %0, %1, %cst {dimension_numbers = #tpu.dot_dimension_numbers<[1], [0], [0], [1], [0, 0, 1, 1], [], []>} : vector<8x896xbf16>, vector<896x128xbf16>, vector<8x128xf32> -> vector<8x128xf32>
    %c0_3 = arith.constant 0 : index
    %c0_4 = arith.constant 0 : index
    %3 = vector.load %arg3[%c0_3, %c0_4] : memref<1x128xf32, #tpu.memory_space<vmem>>, vector<1x128xf32>
    %4 = vector.broadcast %3 : vector<1x128xf32> to vector<8x128xf32>
    %5 = arith.addf %2, %4 : vector<8x128xf32>
    %c0_5 = arith.constant 0 : index
    %c0_6 = arith.constant 0 : index
    %6 = vector.load %arg4[%c0_5, %c0_6] : memref<8x128xf32, #tpu.memory_space<vmem>>, vector<8x128xf32>
    tpu.vector_store %arg4[%c0_5, %c0_6], %5 {strides = array<i32>} : memref<8x128xf32, #tpu.memory_space<vmem>>, vector<8x128xf32>,
    return
  }
  func.func @transform_0(%arg0: i32) -> (i32, i32) {
    %c0_i32 = arith.constant 0 : i32
    %c0_i32_0 = arith.constant 0 : i32
    return %arg0, %c0_i32 : i32, i32
  }
  func.func @transform_1(%arg0: i32) -> (i32, i32) {
    %c0_i32 = arith.constant 0 : i32
    %c0_i32_0 = arith.constant 0 : i32
    %c0_i32_1 = arith.constant 0 : i32
    return %c0_i32, %c0_i32_0 : i32, i32
  }
  func.func @transform_2(%arg0: i32) -> (i32, i32) {
    %c0_i32 = arith.constant 0 : i32
    %c0_i32_0 = arith.constant 0 : i32
    %c0_i32_1 = arith.constant 0 : i32
    return %c0_i32, %c0_i32_0 : i32, i32
  }
  func.func @transform_3(%arg0: i32) -> (i32, i32) {
    %c0_i32 = arith.constant 0 : i32
    %c0_i32_0 = arith.constant 0 : i32
    return %arg0, %c0_i32 : i32, i32
  }
}

</mosaic_0001>

<bundles_post_ra>
// kernel: svm_forward.1
= control target key start
LH: loop header
LB: loop body
LE: loop exit
PB: predicated region body
PF: predicated region fallthrough
CT: control target
= control target key end

     0   :  { %8 = vsyncpa [#allocation3], 0  ;;  %s928_s12 = smov [#allocation2]   ;;  %s974_s0 = inlined_call_operand.vmem [shape: bf16[8,896], index: 0, kind: input, shape index: {}]   ;;  %s975_s1 = inlined_call_operand.hbm [shape: bf16[896,128], index: 1, kind: input, shape index: {}]   ;;  %s976_s2 = inlined_call_operand.vmem [shape: f32[1,128], index: 2, kind: input, shape index: {}]   ;;  %s977_s3 = inlined_call_operand.vmem [shape: f32[8,128], index: 3, kind: output, shape index: {}]  }
   0x1   :  { %s16_s13 = sshll.u32 %s928_s12, 4  ;;  %s17_s13 = int_to_ptr.vmem [resolvable:$true] %s16_s13 }
   0x2   :  { %s914_s14 = scalar_lea.vmem %s17_s13, 7168  ;;  %p919_p1 = scmp.lt.s32.totalorder %s17_s13, %s17_s13 }
   0x3   :  { %p915_p0 = scmp.ne.s32.totalorder %s17_s13, %s914_s14  ;;  %p920_p2 = scmp.lt.s32.totalorder %s914_s14, %s914_s14 }
   0x5   :  { %p921_p3 = por %p920_p2, %p919_p1 }
   0x7   :  { %p922_p4 = pnand %p921_p3, %p915_p0 }
   0x9   :  { %925 = shalt.err (!%p922_p4)
}
   0xa   :  { %s929_s15 = smov 64   ;;  %s930_s16 = smov 4  }
   0xb   :  { %22 = dma.hbm_to_vmem [thread:$0]  %s975_s1, 7168, %s17_s13, [#allocation3], %s929_s15, %s929_s15, %s930_s16  }
   0xc   :  { %926 = dma.done.wait [#allocation3], 7168  }
   0xd   :  { %927 = vsyncadd [#allocation3], 4294960128  ;;  %v843_v0 = vld [vmem:[#allocation2 + $0x78] sm:$0xff]   ;;  %v847_v4 = vld [vmem:[#allocation2 + $0x70] sm:$0xff]   ;;  %v931_v39 = vmov 0.0   ;;  %vm932_vm0 = vmmov 0  }
   0xe   :  { %v844_v1 = vld [vmem:[#allocation2 + $0xf8] sm:$0xff]   ;;  %743 = vmatprep.subr.bf16.mxu0 %v843_v0  ;;  %v848_v5 = vld [vmem:[#allocation2 + $0xf0] sm:$0xff]   ;;  %v851_v8 = vld [vmem:[#allocation2 + $0x68] sm:$0xff]  }
   0xf   :  { %v845_v2 = vld [vmem:[#allocation2 + $0x38] sm:$0xff]   ;;  %765 = vmatprep.subr.bf16.mxu1 %v844_v1  ;;  %v849_v6 = vld [vmem:[#allocation2 + $0x30] sm:$0xff]   ;;  %v852_v9 = vld [vmem:[#allocation2 + $0xe8] sm:$0xff]  }
  0x10   :  { %v846_v3 = vld [vmem:[#allocation2 + $0xb8] sm:$0xff]   ;;  %744 = vmatpush3.bf16.msra.mxu0 %v845_v2  ;;  %v850_v7 = vld [vmem:[#allocation2 + $0xb0] sm:$0xff]   ;;  %v853_v10 = vld [vmem:[#allocation2 + $0x28] sm:$0xff]  }
  0x11   :  { %766 = vmatpush3.bf16.msra.mxu1 %v846_v3  ;;  %745 = vmatprep.subr.bf16.mxu0 %v847_v4  ;;  %v854_v11 = vld [vmem:[#allocation2 + $0xa8] sm:$0xff]   ;;  %v855_v12 = vld [vmem:[#allocation2 + $0x60] sm:$0xff]   ;;  %v859_v16 = vld [vmem:[#allocation2 + $0x58] sm:$0xff]  }
  0x12   :  { %767 = vmatprep.subr.bf16.mxu1 %v848_v5  ;;  %v856_v13 = vld [vmem:[#allocation2 + $0xe0] sm:$0xff]   ;;  %v860_v17 = vld [vmem:[#allocation2 + $0xd8] sm:$0xff]   ;;  %v863_v20 = vld [vmem:[#allocation2 + $0x50] sm:$0xff]  }
  0x13   :  { %v857_v14 = vld [vmem:[#allocation2 + $0x20] sm:$0xff]   ;;  %v861_v18 = vld [vmem:[#allocation2 + $0x18] sm:$0xff]   ;;  %v864_v21 = vld [vmem:[#allocation2 + $0xd0] sm:$0xff]  }
  0x14   :  { %746 = vmatpush3.bf16.msra.mxu0 %v849_v6  ;;  %v858_v15 = vld [vmem:[#allocation2 + $0xa0] sm:$0xff]   ;;  %v862_v19 = vld [vmem:[#allocation2 + $0x98] sm:$0xff]   ;;  %v865_v22 = vld [vmem:[#allocation2 + $0x10] sm:$0xff]  }
  0x15   :  { %768 = vmatpush3.bf16.msra.mxu1 %v850_v7  ;;  %747 = vmatprep.subr.bf16.mxu0 %v851_v8  ;;  %v866_v23 = vld [vmem:[#allocation2 + $0x90] sm:$0xff]   ;;  %v867_v24 = vld [vmem:[#allocation2 + $0x48] sm:$0xff]   ;;  %v871_v28 = vld [vmem:[#allocation2 + $0x40] sm:$0xff]  }
  0x16   :  { %769 = vmatprep.subr.bf16.mxu1 %v852_v9  ;;  %v868_v25 = vld [vmem:[#allocation2 + $0xc8] sm:$0xff]   ;;  %v872_v29 = vld [vmem:[#allocation2 + $0xc0] sm:$0xff]   ;;  %v879_v38 = vld [vmem:[#allocation2 + $0x178] sm:$0xff]  }
  0x17   :  { %v869_v26 = vld [vmem:[#allocation2 + $0x8] sm:$0xff]   ;;  %v873_v30 = vld [vmem:[#allocation2] sm:$0xff]   ;;  %v880_v40 = vld [vmem:[#allocation2 + $0x138] sm:$0xff]  }
  0x18   :  { %748 = vmatpush3.bf16.msra.mxu0 %v853_v10  ;;  %v870_v27 = vld [vmem:[#allocation2 + $0x88] sm:$0xff]   ;;  %v874_v31 = vld [vmem:[#allocation2 + $0x80] sm:$0xff]   ;;  %v881_v41 = vld [vmem:[#allocation2 + $0x1b8] sm:$0xff]  }
  0x19   :  { %770 = vmatpush3.bf16.msra.mxu1 %v854_v11  ;;  %749 = vmatprep.subr.bf16.mxu0 %v855_v12  ;;  %v29_v32 = vld [vmem:[%s974_s0] sm:$0xff]  ;;  %v30_v33 = vld [vmem:[%s974_s0 + $0x8] sm:$0xff]  ;;  %v882_v42 = vld [vmem:[#allocation2 + $0x170] sm:$0xff]  }
  0x1a   :  { %771 = vmatprep.subr.bf16.mxu1 %v856_v13  ;;  %v680_v34 = vcombine.low %v29_v32, %v29_v32  ;;  %v681_v35 = vcombine.high %v29_v32, %v29_v32  ;;  %v682_v36 = vcombine.low %v30_v33, %v30_v33  ;;  %v683_v37 = vcombine.high %v30_v33, %v30_v33  ;;  %v883_v43 = vld [vmem:[#allocation2 + $0x130] sm:$0xff]   ;;  %v885_v45 = vld [vmem:[#allocation2 + $0x168] sm:$0xff]   ;;  %v888_v48 = vld [vmem:[#allocation2 + $0x160] sm:$0xff]  }
  0x1b   :  { %v884_v44 = vld [vmem:[#allocation2 + $0x1b0] sm:$0xff]   ;;  %v887_v46 = vld [vmem:[#allocation2 + $0x1a8] sm:$0xff]   ;;  %v890_v49 = vld [vmem:[#allocation2 + $0x1a0] sm:$0xff]  }
  0x1c   :  { %750 = vmatpush3.bf16.msra.mxu0 %v857_v14  ;;  %545 = vmatprep.mubr.bf16.mxu0 %v681_v35  ;;  %v886_v47 = vld [vmem:[#allocation2 + $0x128] sm:$0xff]   ;;  %v889_v50 = vld [vmem:[#allocation2 + $0x120] sm:$0xff]   ;;  %v891_v51 = vld [vmem:[#allocation2 + $0x158] sm:$0xff]  }
  0x1d   :  { %772 = vmatpush3.bf16.msra.mxu1 %v858_v15  ;;  %751 = vmatprep.subr.bf16.mxu0 %v859_v16  ;;  %v893_v52 = vld [vmem:[#allocation2 + $0x198] sm:$0xff]   ;;  %v894_v54 = vld [vmem:[#allocation2 + $0x150] sm:$0xff]   ;;  %v897_v57 = vld [vmem:[#allocation2 + $0x148] sm:$0xff]  }
  0x1e   :  { %773 = vmatprep.subr.bf16.mxu1 %v860_v17  ;;  %585 = vmatprep.mubr.bf16.mxu1 %v683_v37  ;;  %v892_v53 = vld [vmem:[#allocation2 + $0x118] sm:$0xff]   ;;  %v896_v55 = vld [vmem:[#allocation2 + $0x190] sm:$0xff]   ;;  %v899_v59 = vld [vmem:[#allocation2 + $0x188] sm:$0xff]  }
  0x1f   :  { %v895_v56 = vld [vmem:[#allocation2 + $0x110] sm:$0xff]   ;;  %v898_v61 = vld [vmem:[#allocation2 + $0x108] sm:$0xff]   ;;  %v900_v62 = vld [vmem:[#allocation2 + $0x140] sm:$0xff]  }
  0x20   :  { %752 = vmatpush3.bf16.msra.mxu0 %v861_v18  ;;  %v31_v58 = vld [vmem:[%s974_s0 + $0x10] sm:$0xff]  ;;  %v902_v63 = vld [vmem:[#allocation2 + $0x180] sm:$0xff]   ;;  %v905_v1 = vld [vmem:[%s974_s0 + $0x18] ss:$0 sps:$4 sm:$0xff]  }
  0x21   :  { %774 = vmatpush3.bf16.msra.mxu1 %v862_v19  ;;  %753 = vmatprep.subr.bf16.mxu0 %v863_v20  ;;  %v685_v60 = vcombine.high %v31_v58, %v31_v58  ;;  %v901_v0 = vld [vmem:[#allocation2 + $0x100] sm:$0xff]   ;;  %v684_v2 = vcombine.low %v31_v58, %v31_v58 }
  0x22   :  { %775 = vmatprep.subr.bf16.mxu1 %v864_v21  ;;  %v679_v12 = vld [vmem:[%s976_s2] ss:$0 sm:$0xff] }
  0x24   :  { %754 = vmatpush3.bf16.msra.mxu0 %v865_v22 }
  0x25   :  { %776 = vmatpush3.bf16.msra.mxu1 %v866_v23  ;;  %755 = vmatprep.subr.bf16.mxu0 %v867_v24 }
  0x26   :  { %777 = vmatprep.subr.bf16.mxu1 %v868_v25 }
  0x28   :  { %756 = vmatpush3.bf16.msra.mxu0 %v869_v26 }
  0x29   :  { %778 = vmatpush3.bf16.msra.mxu1 %v870_v27  ;;  %757 = vmatprep.subr.bf16.mxu0 %v871_v28 }
  0x2a   :  { %779 = vmatprep.subr.bf16.mxu1 %v872_v29 }
  0x2c   :  { %758 = vmatpush3.bf16.msra.mxu0 %v873_v30 }
  0x2d   :  { %780 = vmatpush3.bf16.msra.mxu1 %v874_v31  ;;  %787 = vmatprep.subr.bf16.mxu0 %v879_v38 }
  0x2e   :  { %818 = vmatprep.subr.bf16.mxu1 %v931_v39 }
  0x2f   :  { %546 = vmatmul.mubr.bf16.vlgmr.msra.gmra.mxu0 %v680_v34 }
  0x30   :  { %586 = vmatmul.mubr.bf16.vlgmr.msra.gmra.mxu1 %v682_v36  ;;  %788 = vmatpush3.bf16.msra.mxu0 %v880_v40 }
  0x31   :  { %819 = vmatpush3.bf16.msra.mxu1 %v881_v41  ;;  %789 = vmatprep.subr.bf16.mxu0 %v882_v42 }
  0x32   :  { %820 = vmatprep.subr.bf16.mxu1 %v931_v39  ;;  %834 = vmatprep.mubr.msk.bf16.mxu1 %vm932_vm0, %v931_v39 }
  0x33   :  { %625 = vmatprep.mubr.bf16.mxu0 %v685_v60 }
  0x34   :  { %790 = vmatpush3.bf16.msra.mxu0 %v883_v43 }
  0x35   :  { %821 = vmatpush3.bf16.msra.mxu1 %v884_v44  ;;  %791 = vmatprep.subr.bf16.mxu0 %v885_v45 }
  0x36   :  { %822 = vmatprep.subr.bf16.mxu1 %v931_v39 }
  0x38   :  { %792 = vmatpush3.bf16.msra.mxu0 %v886_v47 }
  0x39   :  { %823 = vmatpush3.bf16.msra.mxu1 %v887_v46  ;;  %793 = vmatprep.subr.bf16.mxu0 %v888_v48 }
  0x3a   :  { %824 = vmatprep.subr.bf16.mxu1 %v931_v39 }
  0x3c   :  { %794 = vmatpush3.bf16.msra.mxu0 %v889_v50 }
  0x3d   :  { %825 = vmatpush3.bf16.msra.mxu1 %v890_v49  ;;  %795 = vmatprep.subr.bf16.mxu0 %v891_v51 }
  0x3e   :  { %826 = vmatprep.subr.bf16.mxu1 %v931_v39 }
  0x40   :  { %796 = vmatpush3.bf16.msra.mxu0 %v892_v53 }
  0x41   :  { %827 = vmatpush3.bf16.msra.mxu1 %v893_v52  ;;  %797 = vmatprep.subr.bf16.mxu0 %v894_v54 }
  0x42   :  { %828 = vmatprep.subr.bf16.mxu1 %v931_v39 }
  0x44   :  { %798 = vmatpush3.bf16.msra.mxu0 %v895_v56 }
  0x45   :  { %829 = vmatpush3.bf16.msra.mxu1 %v896_v55  ;;  %799 = vmatprep.subr.bf16.mxu0 %v897_v57 }
  0x46   :  { %830 = vmatprep.subr.bf16.mxu1 %v931_v39 }
  0x48   :  { %800 = vmatpush3.bf16.msra.mxu0 %v898_v61 }
  0x49   :  { %831 = vmatpush3.bf16.msra.mxu1 %v899_v59  ;;  %801 = vmatprep.subr.bf16.mxu0 %v900_v62 }
  0x4a   :  { %832 = vmatprep.subr.bf16.mxu1 %v931_v39 }
  0x4c   :  { %802 = vmatpush3.bf16.msra.mxu0 %v901_v0 }
  0x4d   :  { %833 = vmatpush3.bf16.msra.mxu1 %v902_v63 }
  0x4f   :  { %626 = vmatmul.mubr.bf16.vlgmr.msra.gmra.mxu0 %v684_v2 }
  0x50   :  { %835 = vmatmul.mubr.bf16.vlgmr.msra.gmra.mxu1 %v905_v1 }
  0xef   :  { %v759_v3 = vpop.f32.mrf.mxu0 }
  0xf0   :  { %v781_v4 = vpop.f32.mrf.mxu1 }
  0xf1   :  { %v760_v5 = vpop.f32.mrf.mxu0 }
  0xf2   :  { %v782_v6 = vpop.f32.mrf.mxu1  ;;  %v761_v11 = vadd.f32 %v760_v5, %v759_v3 }
  0xf3   :  { %v762_v7 = vpop.f32.mrf.mxu0  ;;  %v783_v14 = vadd.f32 %v782_v6, %v781_v4 }
  0xf4   :  { %v784_v8 = vpop.f32.mrf.mxu1  ;;  %v548_v13 = vadd.f32 %v761_v11, %v679_v12 }
  0xf5   :  { %v763_v9 = vpop.f32.mrf.mxu0 }
  0xf6   :  { %v785_v10 = vpop.f32.mrf.mxu1  ;;  %v588_v19 = vadd.f32 %v783_v14, %v548_v13 }
 0x10f   :  { %v803_v16 = vpop.f32.mrf.mxu0 }
 0x110   :  { %v667_v15 = vpop.f32.mrf.mxu1 }
 0x111   :  { %v804_v18 = vpop.f32.mrf.mxu0 }
 0x112   :  { %v836_v17 = vpop.f32.mrf.mxu1  ;;  %v805_v20 = vadd.f32 %v804_v18, %v803_v16 }
 0x113   :  { %v806_v22 = vpop.f32.mrf.mxu0 }
 0x114   :  { %v670_v21 = vpop.f32.mrf.mxu1  ;;  %v628_v23 = vadd.f32 %v805_v20, %v588_v19 }
 0x115   :  { %v807_v25 = vpop.f32.mrf.mxu0 }
 0x116   :  { %v837_v24 = vpop.f32.mrf.mxu1  ;;  %v668_v26 = vadd.f32 %v667_v15, %v628_v23 }
 0x118   :  { %673 = vst [vmem:[%s977_s3] sm:$0xff] %v668_v26 }
 0x119   :  { %678 = vsyncpa [#allocation3], 1 }

</bundles_post_ra>
